<compile_context>
chip_gen: v6e
topology: v6e:2x2x1
jax: 0.10.0
libtpu: 0.0.40
codegen_flags: <defaults>
</compile_context>

<pallas_src>
import jax
import jax.numpy as jnp
from jax.experimental import pallas as pl
from jax.experimental.pallas import tpu as pltpu


# ------------------------------- helpers ------------------------------------
def _ceil_to(x, m):
    return ((x + m - 1) // m) * m


def _sublane(nbytes):
    # Packed sublane multiple for a dtype: 8 for 4-byte, 16 for 2-byte, ...
    return 8 * max(1, 4 // int(nbytes))


def _vmem_block_bytes(d, T, F, C, Ap, Fv, in_bytes, out_bytes):
    """Rough VMEM bytes for one grid step (BlockSpec double-buffers every operand)."""
    q = 2 * d * T * F * in_bytes
    v = 2 * d * T * Fv * in_bytes
    # TODO(synk): weights have a constant index_map; single-buffering them
    # (pl.Buffered(1)) would reclaim half of this on v7x for large F*C.
    w = 2 * (F * C + C + C * Ap + Ap) * in_bytes
    o = 2 * d * Ap * Fv * out_bytes
    interm = d * T * (C + 2 * Ap) * 4 + 2 * d * Ap * Fv * 4
    return q + v + w + o + interm


def _choose_block_b(B, T, F, C, Ap, Fv, in_bytes, out_bytes, vmem_budget):
    """Largest divisor of B that fits the VMEM budget and keeps blocks tile-legal,
    preferring >= 2 grid steps so v7x's two TensorCores both get work."""
    sub_in = _sublane(in_bytes)
    divisors = [d for d in range(B, 0, -1) if B % d == 0]

    def layout_ok(d):
        # (8,128)-rule for the (block_b*T, F) query block; v / out blocks are
        # full-dim or Ap-padded (always sublane multiples) by construction.
        return d == B or (d * T) % sub_in == 0

    feasible = [d for d in divisors
                if layout_ok(d)
                and _vmem_block_bytes(d, T, F, C, Ap, Fv, in_bytes, out_bytes) <= vmem_budget]
    multi = [d for d in feasible if d <= B // 2]     # >= 2 grid steps (v7x megacore)
    if multi:
        return multi[0]
    if feasible:
        return feasible[0]
    for d in reversed(divisors):                     # smallest legal block as fallback
        if layout_ok(d):
            return d
    return B


# ------------------------------- kernel -------------------------------------
def attn_pool_kernel(q2d_ref, v_ref, w1_ref, b1_ref, w2_ref, b2_ref, out_ref):
    # q2d_ref: (Bb*T, F)    query rows of this batch block (channels-last)
    # v_ref:   (Bb, T, Fv)  value block
    # w1_ref:  (F, C), b1_ref: (1, C)    -- Linear(F, F//2), weight pre-transposed
    # w2_ref:  (C, Ap), b2_ref: (1, Ap)  -- Linear(F//2, num_attn), zero-padded to Ap
    # out_ref: (Bb*Ap, Fv)  sublane-dense output slab
    Bb, T, Fv = v_ref.shape
    Ap = w2_ref.shape[1]

    # ---- scorer MLP fused over all Bb*T rows: two large MXU matmuls ----
    h = jnp.dot(q2d_ref[...], w1_ref[...],
                preferred_element_type=jnp.float32) + b1_ref[...]
    h = jnp.maximum(h, 0.0)                                            # ReLU
    # Dropout(p) between ReLU and Linear2 is identity at inference.
    # TODO(synk): training-mode Dropout not implemented (inference-only semantics).
    score = jnp.dot(h.astype(w2_ref.dtype), w2_ref[...],
                    preferred_element_type=jnp.float32) + b2_ref[...]  # (Bb*T, Ap) f32

    # ---- softmax over T, vectorized over the whole batch block (f32) ----
    # (Bb*T, Ap) -> (Bb, T, Ap) is a layout no-op when T % 8 == 0; the swap of
    # the minor two dims mirrors the torch .transpose(-2, -1).
    s = jnp.swapaxes(score.reshape(Bb, T, Ap), 1, 2)                   # (Bb, Ap, T)
    m = jnp.max(s, axis=-1, keepdims=True)                             # (Bb, Ap, 1)
    e = jnp.exp(s - m)                                                 # (Bb, Ap, T)
    denom = jnp.sum(e, axis=-1, keepdims=True)                         # (Bb, Ap, 1)

    # ---- pooling: one batched MXU contraction over T (flash-style pattern) ----
    acc = jnp.einsum("bat,btf->baf", e.astype(v_ref.dtype), v_ref[...],
                     preferred_element_type=jnp.float32)               # (Bb, Ap, Fv)

    # Deferred normalization: reciprocal on the EUP slot, one multiply on (Ap, Fv)
    # elements per batch instead of dividing the (Ap, T) probabilities.
    out = acc * pl.reciprocal(denom, approx=True)                      # (Bb, Ap, Fv)

    # Dense full-block store: Ap is a sublane multiple, so this reshape is a pure
    # re-indexing of vregs and the store is an unmasked vst.
    out_ref[...] = out.reshape(Bb * Ap, Fv).astype(out_ref.dtype)
    # TODO(synk): self.p_attn (torch side attribute) is not materialized.


# ------------------------------- wrapper ------------------------------------
def attn_pool1d_forward(query, value, params, mask=None, *, block_b=None):
    """AttnPool1d.forward: query (B, T, F), value (B, T, Fv) -> (B, num_attn, Fv)."""
    # TODO(synk): optional mask path (masked_fill with get_masked_fill_value) not implemented.
    assert mask is None
    B, T, F = query.shape
    Bv, Tv, Fv = value.shape
    assert Bv == B and Tv == T
    C, F_ = params["w1"].shape   # nn.Linear(F, F//2).weight: (C, F)
    A, C_ = params["w2"].shape   # nn.Linear(F//2, A).weight: (A, C)
    assert F_ == F and C_ == C

    # Native-dtype data path (bf16 halves HBM/VMEM traffic; softmax stays f32 in-kernel).
    dt = query.dtype
    in_bytes = jnp.dtype(dt).itemsize
    out_dtype = dt
    out_bytes = jnp.dtype(out_dtype).itemsize

    # Pad num_attn up to the output sublane tile so stores are sublane-dense and
    # the in-kernel (Bb, Ap, Fv) -> (Bb*Ap, Fv) merge is a layout no-op.
    Ap = _ceil_to(A, _sublane(out_bytes))

    # Per-generation VMEM budget (v5e/v6e 128 MiB, v7x 64 MiB per TensorCore).
    try:
        vmem_cap = int(pltpu.get_tpu_info().vmem_capacity_bytes)
    except Exception:
        vmem_cap = 64 * 1024 * 1024       # conservative (v7x per-core) fallback
    vmem_budget = int(vmem_cap * 0.6)

    if block_b is None:
        block_b = _choose_block_b(B, T, F, C, Ap, Fv, in_bytes, out_bytes, vmem_budget)
    assert B % block_b == 0
    grid = (B // block_b,)

    est = _vmem_block_bytes(block_b, T, F, C, Ap, Fv, in_bytes, out_bytes)
    # Raise the scoped-VMEM limit above the 16/32 MiB defaults, capped below physical.
    vmem_limit = int(min(int(0.9 * vmem_cap), max(2 * est, 32 * 1024 * 1024)))

    # Free layout prep: contiguous reshape + tiny weight transposes / zero-pads.
    q2d = query.reshape(B * T, F)
    v = value.astype(dt)
    w1t = params["w1"].T.astype(dt)                                    # (F, C)
    b1 = params["b1"].reshape(1, C).astype(dt)                         # (1, C)
    w2t = jnp.zeros((C, Ap), dt).at[:, :A].set(params["w2"].T.astype(dt))   # (C, Ap)
    b2 = jnp.zeros((1, Ap), dt).at[:, :A].set(params["b2"].reshape(1, A).astype(dt))

    cost = pl.CostEstimate(
        flops=2 * B * T * F * C + 2 * B * T * C * Ap + 2 * B * Ap * T * Fv,
        transcendentals=B * T * Ap + B * Ap,
        bytes_accessed=in_bytes * (B * T * F + B * T * Fv + F * C + C + C * Ap + Ap)
                       + out_bytes * B * Ap * Fv,
    )

    out2d = pl.pallas_call(
        attn_pool_kernel,
        out_shape=jax.ShapeDtypeStruct((B * Ap, Fv), out_dtype),
        grid=grid,
        in_specs=[
            pl.BlockSpec((block_b * T, F), lambda i: (i, 0)),       # query rows
            pl.BlockSpec((block_b, T, Fv), lambda i: (i, 0, 0)),    # value
            pl.BlockSpec((F, C), lambda i: (0, 0)),                 # w1^T
            pl.BlockSpec((1, C), lambda i: (0, 0)),                 # b1
            pl.BlockSpec((C, Ap), lambda i: (0, 0)),                # w2^T (padded)
            pl.BlockSpec((1, Ap), lambda i: (0, 0)),                # b2  (padded)
        ],
        out_specs=pl.BlockSpec((block_b * Ap, Fv), lambda i: (i, 0)),
        compiler_params=pltpu.CompilerParams(
            dimension_semantics=("parallel",),
            vmem_limit_bytes=vmem_limit,
        ),
        cost_estimate=cost,
    )(q2d, v, w1t, b1, w2t, b2)

    # Free views back to the module's (B, num_attn, Fv) layout (drop the pad heads).
    return out2d.reshape(B, Ap, Fv)[:, :A, :]
    # TODO(synk): for long production sequences add a T grid axis ("arbitrary",
    # last) with online-softmax m/l/acc scratch so block VMEM does not scale with T.


# --------------------------- pure-JAX reference ------------------------------
def reference_forward(query, value, params):
    B = query.shape[0]
    A = params["w2"].shape[0]
    h = jnp.maximum(jnp.einsum("btf,cf->btc", query, params["w1"]) + params["b1"], 0.0)
    score = jnp.einsum("btc,ac->bta", h, params["w2"]) + params["b2"]   # (B, T, A)
    score = jnp.swapaxes(score, -2, -1)                                 # (B, A, T)
    p = jax.nn.softmax(score, axis=-1)                                  # softmax over T
    out = jnp.matmul(p, value)                                          # (B, A, Fv)
    return out.reshape(B, A, -1)


if __name__ == "__main__":
    # Small shapes consistent with AttnPool1d: batch=2, seq=16, num_features=32, num_attn=2.
    B, T = 2, 16
    F = 32                # num_features
    C = F // 2            # scorer hidden dim
    A = 2                 # num_attn
    Fv = 32               # value feature dim

    key = jax.random.PRNGKey(0)
    ks = jax.random.split(key, 6)
    scale = 0.1
    params = {
        "w1": scale * jax.random.normal(ks[0], (C, F), jnp.float32),  # Linear(F, F//2).weight
        "b1": scale * jax.random.normal(ks[1], (C,), jnp.float32),
        "w2": scale * jax.random.normal(ks[2], (A, C), jnp.float32),  # Linear(F//2, A).weight
        "b2": scale * jax.random.normal(ks[3], (A,), jnp.float32),
    }
    query = jax.random.normal(ks[4], (B, T, F), jnp.float32)
    value = jax.random.normal(ks[5], (B, T, Fv), jnp.float32)

    ref = reference_forward(query, value, params)

    # f32 path (tolerance leaves room for the approximate EUP reciprocal in the denom).
    out = jax.block_until_ready(attn_pool1d_forward(query, value, params))
    assert out.shape == (B, A, Fv)
    assert jnp.allclose(out, ref, atol=5e-3, rtol=5e-3), "f32 mismatch vs reference"

    # bf16 path: native-dtype inputs feed the MXU's bf16 path; softmax stays f32.
    out_bf16 = jax.block_until_ready(
        attn_pool1d_forward(query.astype(jnp.bfloat16), value.astype(jnp.bfloat16), params))
    assert out_bf16.shape == (B, A, Fv)
    assert jnp.allclose(out_bf16.astype(jnp.float32), ref, atol=5e-2, rtol=5e-2), \
        "bf16 mismatch vs reference"

    print("KERNEL_OK")
</pallas_src>

<mosaic_0001>
module attributes {stable_mosaic.version = 11 : i64} {
  func.func @attn_pool_kernel(%arg0: i32, %arg1: memref<16x32xf32, #tpu.memory_space<vmem>>, %arg2: memref<1x16x32xf32, #tpu.memory_space<vmem>>, %arg3: memref<32x16xf32, #tpu.memory_space<vmem>>, %arg4: memref<1x16xf32, #tpu.memory_space<vmem>>, %arg5: memref<16x8xf32, #tpu.memory_space<vmem>>, %arg6: memref<1x8xf32, #tpu.memory_space<vmem>>, %arg7: memref<8x32xf32, #tpu.memory_space<vmem>>) attributes {dimension_semantics = [#tpu.dimension_semantics<parallel>], iteration_bounds = array<i64: 2>, scalar_prefetch = 0 : i64, scratch_operands = 0 : i64, tpu.core_type = #tpu.core_type<tc>, window_params = [{transform_indices = @transform_0, window_bounds = array<i64: 16, 32>}, {transform_indices = @transform_1, window_bounds = array<i64: 1, 16, 32>}, {pipeline_mode = #tpu.pipeline_mode<synchronous>, transform_indices = @transform_2, window_bounds = array<i64: 32, 16>}, {pipeline_mode = #tpu.pipeline_mode<synchronous>, transform_indices = @transform_3, window_bounds = array<i64: 1, 16>}, {pipeline_mode = #tpu.pipeline_mode<synchronous>, transform_indices = @transform_4, window_bounds = array<i64: 16, 8>}, {pipeline_mode = #tpu.pipeline_mode<synchronous>, transform_indices = @transform_5, window_bounds = array<i64: 1, 8>}, {transform_indices = @transform_6, window_bounds = array<i64: 8, 32>}]} {
    %c0 = arith.constant 0 : index
    %c0_0 = arith.constant 0 : index
    %0 = vector.load %arg1[%c0, %c0_0] : memref<16x32xf32, #tpu.memory_space<vmem>>, vector<16x32xf32>
    %c0_1 = arith.constant 0 : index
    %c0_2 = arith.constant 0 : index
    %1 = vector.load %arg3[%c0_1, %c0_2] : memref<32x16xf32, #tpu.memory_space<vmem>>, vector<32x16xf32>
    %cst = arith.constant dense<0.000000e+00> : vector<16x16xf32>
    %2 = tpu.matmul %0, %1, %cst {dimension_numbers = #tpu.dot_dimension_numbers<[1], [0], [0], [1], [0, 0, 1, 1], [], []>} : vector<16x32xf32>, vector<32x16xf32>, vector<16x16xf32> -> vector<16x16xf32>
    %c0_3 = arith.constant 0 : index
    %c0_4 = arith.constant 0 : index
    %3 = vector.load %arg4[%c0_3, %c0_4] : memref<1x16xf32, #tpu.memory_space<vmem>>, vector<1x16xf32>
    %4 = vector.broadcast %3 : vector<1x16xf32> to vector<16x16xf32>
    %5 = arith.addf %2, %4 : vector<16x16xf32>
    %cst_5 = arith.constant 0.000000e+00 : f32
    %6 = vector.broadcast %cst_5 : f32 to vector<16x16xf32>
    %7 = arith.maximumf %5, %6 : vector<16x16xf32>
    %c0_6 = arith.constant 0 : index
    %c0_7 = arith.constant 0 : index
    %8 = vector.load %arg5[%c0_6, %c0_7] : memref<16x8xf32, #tpu.memory_space<vmem>>, vector<16x8xf32>
    %cst_8 = arith.constant dense<0.000000e+00> : vector<16x8xf32>
    %9 = tpu.matmul %7, %8, %cst_8 {dimension_numbers = #tpu.dot_dimension_numbers<[1], [0], [0], [1], [0, 0, 1, 1], [], []>} : vector<16x16xf32>, vector<16x8xf32>, vector<16x8xf32> -> vector<16x8xf32>
    %c0_9 = arith.constant 0 : index
    %c0_10 = arith.constant 0 : index
    %10 = vector.load %arg6[%c0_9, %c0_10] : memref<1x8xf32, #tpu.memory_space<vmem>>, vector<1x8xf32>
    %11 = vector.broadcast %10 : vector<1x8xf32> to vector<16x8xf32>
    %12 = arith.addf %9, %11 : vector<16x8xf32>
    %13 = vector.shape_cast %12 : vector<16x8xf32> to vector<1x16x8xf32>
    %14 = tpu.transpose %13, [0, 2, 1] : vector<1x16x8xf32> -> vector<1x8x16xf32>
    %cst_11 = arith.constant dense<0xFF800000> : vector<1x8xf32>
    %15 = vector.multi_reduction <maximumf>, %14, %cst_11 [2] : vector<1x8x16xf32> to vector<1x8xf32>
    %16 = vector.shape_cast %15 : vector<1x8xf32> to vector<1x8x1xf32>
    %17 = vector.broadcast %16 : vector<1x8x1xf32> to vector<1x8x16xf32>
    %18 = arith.subf %14, %17 : vector<1x8x16xf32>
    %19 = math.exp %18 : vector<1x8x16xf32>
    %cst_12 = arith.constant dense<0.000000e+00> : vector<1x8xf32>
    %20 = vector.multi_reduction <add>, %19, %cst_12 [2] : vector<1x8x16xf32> to vector<1x8xf32>
    %21 = vector.shape_cast %20 : vector<1x8xf32> to vector<1x8x1xf32>
    %c0_13 = arith.constant 0 : index
    %c0_14 = arith.constant 0 : index
    %c0_15 = arith.constant 0 : index
    %22 = vector.load %arg2[%c0_13, %c0_14, %c0_15] : memref<1x16x32xf32, #tpu.memory_space<vmem>>, vector<1x16x32xf32>
    "tpu.trace_start"() <{level = 10 : i32, message = "bat,btf->baf"}> : () -> ()
    %cst_16 = arith.constant dense<0.000000e+00> : vector<1x8x32xf32>
    %23 = tpu.matmul %19, %22, %cst_16 {dimension_numbers = #tpu.dot_dimension_numbers<[2], [1], [1], [2], [0, 0, 0, 1, 1, 2], [0], [0]>} : vector<1x8x16xf32>, vector<1x16x32xf32>, vector<1x8x32xf32> -> vector<1x8x32xf32>
    "tpu.trace_stop"() : () -> ()
    %24 = tpu.reciprocal %21 {approx = true} : vector<1x8x1xf32> -> vector<1x8x1xf32>
    %25 = vector.broadcast %24 : vector<1x8x1xf32> to vector<1x8x32xf32>
    %26 = arith.mulf %23, %25 : vector<1x8x32xf32>
    %27 = vector.shape_cast %26 : vector<1x8x32xf32> to vector<8x32xf32>
    %c0_17 = arith.constant 0 : index
    %c0_18 = arith.constant 0 : index
    %28 = vector.load %arg7[%c0_17, %c0_18] : memref<8x32xf32, #tpu.memory_space<vmem>>, vector<8x32xf32>
    tpu.vector_store %arg7[%c0_17, %c0_18], %27 {strides = array<i32>} : memref<8x32xf32, #tpu.memory_space<vmem>>, vector<8x32xf32>,
    return
  }
  func.func @transform_0(%arg0: i32) -> (i32, i32) {
    %c0_i32 = arith.constant 0 : i32
    %c0_i32_0 = arith.constant 0 : i32
    return %arg0, %c0_i32 : i32, i32
  }
  func.func @transform_1(%arg0: i32) -> (i32, i32, i32) {
    %c0_i32 = arith.constant 0 : i32
    %c0_i32_0 = arith.constant 0 : i32
    %c0_i32_1 = arith.constant 0 : i32
    return %arg0, %c0_i32, %c0_i32_0 : i32, i32, i32
  }
  func.func @transform_2(%arg0: i32) -> (i32, i32) {
    %c0_i32 = arith.constant 0 : i32
    %c0_i32_0 = arith.constant 0 : i32
    %c0_i32_1 = arith.constant 0 : i32
    return %c0_i32, %c0_i32_0 : i32, i32
  }
  func.func @transform_3(%arg0: i32) -> (i32, i32) {
    %c0_i32 = arith.constant 0 : i32
    %c0_i32_0 = arith.constant 0 : i32
    %c0_i32_1 = arith.constant 0 : i32
    return %c0_i32, %c0_i32_0 : i32, i32
  }
  func.func @transform_4(%arg0: i32) -> (i32, i32) {
    %c0_i32 = arith.constant 0 : i32
    %c0_i32_0 = arith.constant 0 : i32
    %c0_i32_1 = arith.constant 0 : i32
    return %c0_i32, %c0_i32_0 : i32, i32
  }
  func.func @transform_5(%arg0: i32) -> (i32, i32) {
    %c0_i32 = arith.constant 0 : i32
    %c0_i32_0 = arith.constant 0 : i32
    %c0_i32_1 = arith.constant 0 : i32
    return %c0_i32, %c0_i32_0 : i32, i32
  }
  func.func @transform_6(%arg0: i32) -> (i32, i32) {
    %c0_i32 = arith.constant 0 : i32
    %c0_i32_0 = arith.constant 0 : i32
    return %arg0, %c0_i32 : i32, i32
  }
}

</mosaic_0001>

<bundles_post_ra>
// kernel: tpu_custom_call.1
= control target key start
LH: loop header
LB: loop body
LE: loop exit
PB: predicated region body
PF: predicated region fallthrough
CT: control target
= control target key end

     0   :  { %11 = vsyncpa [#allocation3], 0  ;;  %s997_s0 = inlined_call_operand.vmem [shape: f32[32,32], index: 0, kind: input, shape index: {}]   ;;  %s998_s1 = inlined_call_operand.vmem [shape: f32[2,16,32], index: 1, kind: input, shape index: {}]   ;;  %s999_s2 = inlined_call_operand.vmem [shape: f32[32,16], index: 2, kind: input, shape index: {}]   ;;  %s1000_s3 = inlined_call_operand.vmem [shape: f32[1,16], index: 3, kind: input, shape index: {}]   ;;  %s1001_s4 = inlined_call_operand.vmem [shape: f32[16,8], index: 4, kind: input, shape index: {}]   ;;  %s1002_s5 = inlined_call_operand.vmem [shape: f32[1,8], index: 5, kind: input, shape index: {}]   ;;  %s1003_s6 = inlined_call_operand.hbm [shape: f32[16,32], index: 6, kind: output, shape index: {}]  }
   0x1   :  { %13 = vsyncpa [#allocation3 + $0x1], 0  ;;  %s868_s21 = smov 0   ;;  %s870_s22 = smov 0  }
   0x2   :  { %s872_s23 = smov 0   ;;  %s874_s24 = smov 0  }
   0x3 LB: > { %s889_s25 = sadd.s32 4294967295, %s828_s24   ;;  %s664_s26 = sadd.s32 4294967294, %s828_s24   ;;  %s828_s24 = sphi %s874_s24, %s1009_s24   ;;  %s824_s23 = sphi %s872_s23, %s1008_s23   ;;  %s820_s22 = sphi %s870_s22, %s1007_s22   ;;  %s816_s21 = sphi %s868_s21, %s1006_s21  }
   0x4   : > { %s893_s27 = sadd.s32 1, %s828_s24   ;;  %s162_s28 = sadd.s32 1, %s824_s23 }
   0x5   : > { %s159_s29 = ssub.s32 %s828_s24, %s893_s27  ;;  %p172_p0 = scmp.ne.s32.totalorder %s824_s23, %s820_s22 }
   0x6   : > { %p160_p1 = scmp.eq.s32.totalorder %s159_s29, 0  ;;  %p173_p2 = scmp.eq.s32.totalorder %s889_s25, 1 }
   0x7   : > { %p178_p3 = scmp.ne.s32.totalorder %s820_s22, %s816_s21  ;;  %p179_p4 = scmp.eq.s32.totalorder %s664_s26, 1 }
   0x8   : > { %s904_s30 = scalar_select %p160_p1, %s824_s23, %s162_s28  }
   0x9   : > { %p906_p5 = por %p173_p2, %p172_p0  ;;  %p910_p6 = por %p179_p4, %p178_p3 }
   0xa   : > { %p667_p7 = scmp.ge.s32.totalorder %s828_s24, 1  ;;  %p226_p8 = scmp.lt.s32.totalorder %s828_s24, 3 }
   0xc   : > { %p227_p9 = pnand %p667_p7, %p226_p8 }
   0xd   : > { %s669_s13 = sshll.u32 (!%p227_p9), %s889_s25, 1  ;;  %p267_p11 = scmp.lt.s32.totalorder (!%p227_p9), %s889_s25, 1 }
   0xe   : > { %230 = sbr.rel (%p227_p9) target bundleno = 915 (0x393), region = 44  ;;  %p262_p10 = scmp.lt.s32.totalorder (!%p227_p9), %s669_s13, 3 }
   0xf   : > { %s258_s20 = sand.u32 (!%p227_p9), 1, %s820_s22   ;;  %s681_s28 = sshll.u32 (!%p227_p9), %s889_s25, 7 }
  0x10   : > { %s961_s12 = scalar_lea.hbm (!%p227_p9), %s1003_s6, %s681_s28 }
  0x13   : > { %v277_v0 = vld [vmem:[%s999_s2 + $0x18] sm:$0xff]  ;;  %v276_v1 = vld [vmem:[%s999_s2 + $0x10] sm:$0xff]  ;;  %v275_v2 = vld [vmem:[%s999_s2 + $0x8] sm:$0xff]  ;;  %s1011_s13 = smov (!%p262_p10, %s669_s13), 3  ;;  %vm285_vm0 = vcmask 261120   ;;  %vm378_vm1 = vcmask 130048  }
  0x14   : > { %698 = vmatprep.subr.mxu0 %v277_v0  ;;  %v274_v3 = vld [vmem:[%s999_s2] sm:$0xff]  ;;  %s670_s18 = sshll.u32 %s1011_s13, 3  ;;  %v370_v6 = vld [vmem:[%s1001_s4 + $0x8] sm:$0xff]  ;;  %v830_v22 = vmov 0.0   ;;  %vm831_vm2 = vmmov 0   ;;  %s580_s13 = scalar_lea.sflag [#allocation3], %s258_s20 }
  0x15   : > { %699 = vmatpush3.msra.mxu0 %v277_v0  ;;  %s265_s26 = scalar_lea.vmem %s997_s0, %s670_s18  ;;  %709 = vmatprep.subr.mxu1 %v370_v6  ;;  %v369_v7 = vld [vmem:[%s1001_s4] sm:$0xff] }
  0x16   : > { %700 = vmatprep.subr.mxu0 %v276_v1  ;;  %v272_v4 = vld [vmem:[%s265_s26] sm:$0xff]  ;;  %v273_v5 = vld [vmem:[%s265_s26 + $0x8] sm:$0xff]  ;;  %710 = vmatpush3.msra.mxu1 %v370_v6  ;;  %s268_s15 = scalar_select %p267_p11, %s889_s25, 1 }
  0x17   : > { %701 = vmatpush3.msra.mxu0 %v276_v1  ;;  %706 = vmatprep.mubr.msk.f32.mxu0 %vm285_vm0, %v272_v4  ;;  %v673_v8 = vld [vmem:[%s1000_s3] ss:$0 sm:$0xff]  ;;  %s668_s26 = sshll.u32 %s258_s20, 3  ;;  %s832_s25 = smov [#allocation2]  }
  0x18   : > { %702 = vmatprep.subr.mxu0 %v275_v2  ;;  %711 = vmatprep.subr.mxu1 %v369_v7  ;;  %v676_v16 = vld [vmem:[%s1002_s5] ss:$0 sm:$0xff]  ;;  %s684_s16 = sshll.u32 %s268_s15, 4  ;;  %s260_s29 = scalar_lea.vmem [#allocation2], %s668_s26 }
  0x19   : > { %703 = vmatpush3.msra.mxu0 %v275_v2  ;;  %712 = vmatpush3.msra.mxu1 %v369_v7  ;;  %s271_s19 = scalar_lea.vmem %s998_s1, %s684_s16  ;;  %s593_s9 = sshll.u32 %s260_s29, 4  ;;  %s594_s9 = int_to_ptr.vmem [resolvable:$true] %s593_s9 }
  0x1a   : > { %704 = vmatprep.subr.mxu0 %v274_v3  ;;  %716 = vmatprep.subr.mxu1 %v830_v22  ;;  %v502_v23 = vld [vmem:[%s271_s19 + $0x8] sm:$0xff]  ;;  %v501_v24 = vld [vmem:[%s271_s19] sm:$0xff]  ;;  %s768_s14 = scalar_lea.vmem %s594_s9, 128  ;;  %s772_s15 = sshll.u32 %s832_s25, 4  ;;  %s773_s15 = int_to_ptr.vmem [resolvable:$false] %s772_s15 }
  0x1b   : > { %705 = vmatpush3.msra.mxu0 %v274_v3  ;;  %p769_p12 = scmp.ne.s32.totalorder %s594_s9, %s768_s14  ;;  %s774_s16 = scalar_lea.vmem %s773_s15, 256 }
  0x1c   : > { %707 = vmatmul.mubr.msk.f32.vlgmr.msra.gmra.mxu0 %vm285_vm0, %v273_v5  ;;  %p775_p1 = scmp.lt.s32.totalorder %s594_s9, %s773_s15  ;;  %p776_p2 = scmp.lt.s32.totalorder %s774_s16, %s768_s14 }
  0x1d   : > { %p770_p13 = pnand %p769_p12, %p906_p5 }
  0x1e   : > { %p777_p3 = por %p776_p2, %p775_p1 }
  0x1f   : > { %p771_p0 = pneg %p770_p13 }
  0x21   : > { %p778_p4 = pnand %p777_p3, %p771_p0 }
  0xdc   : > { %v708_v9 = vpop.f32.mrf.mxu0 }
  0xdd   : > { %v364_v10 = vadd.f32 %v708_v9, %v673_v8 }
  0xde   : > { %v358_v11 = vpop.f32.mrf.mxu0 }
  0xdf   : > { %v359_v12 = vadd.f32 %v673_v8, %v358_v11  ;;  %v368_v14 = vmax.f32 %v364_v10, 0.0 }
  0xe1   : > { %v367_v13 = vmax.f32 %v359_v12, 0.0 }
  0xe3   : > { %713 = vmatprep.mubr.msk.f32.mxu1 %vm378_vm1, %v367_v13 }
  0xe4   : > { %714 = vmatmul.mubr.msk.f32.vlgmr.msra.gmra.mxu1 %vm378_vm1, %v368_v14 }
  0xe5   : > { %720 = vmatprep.mubr.msk.f32.mxu1 %vm831_vm2, %v830_v22  ;;  %717 = vmatpush3.msra.mxu1 %v502_v23 }
  0xe6   : > { %718 = vmatprep.subr.mxu1 %v830_v22 }
  0xe7   : > { %719 = vmatpush3.msra.mxu1 %v501_v24 }
 0x1a4   : > { %v715_v15 = vpop.f32.mrf.mxu1 }
 0x1a5   : > { %v457_v19 = vadd.f32 %v715_v15, %v676_v16 }
 0x1a6   : > { %v451_v17 = vpop.f32.mrf.mxu1 }
 0x1a7   : > { %v452_v18 = vadd.f32 %v676_v16, %v451_v17 }
 0x1a9   : > { %460 = vxpose.xlu0.b32.start [1/2] (short) (narrow) %v452_v18, 8 }
 0x1ad   : > { %461 = vxpose.xlu0.b32.end [2/2] (short) (narrow) %v457_v19, 8 }
 0x225   : > { %v476_v20 = vpop.trf.xlu0 }
 0x226   : > { %v492_v21 = vsel %vm378_vm1, %v476_v20, -inf }
 0x227   : > { %493 = vmax.xlane.f32.xlu1 %v492_v21 }
 0x2b0   : > { %v494_v25 = vpop.xlane.xlu1 %493 }
 0x2b1   : > { %v495_v26 = vsub.f32 %v476_v20, %v494_v25 }
 0x2b3   : > { %v496_v27 = vmul.f32 1.442695, %v495_v26 }
 0x2b5   : > { %764 = vpow2.f32 %v496_v27 }
 0x2c2   : > { %v765_v28 = vpop.eup %764 }
 0x2c3   : > { %721 = vmatmul.mubr.msk.f32.vlgmr.msra.gmra.mxu1 %vm378_vm1, %v765_v28  ;;  %v498_v29 = vsel %vm378_vm1, %v765_v28, 0.0 }
 0x2c4   : > { %499 = vadd.xlane.f32.xlu1 %v498_v29 }
 0x34d   : > { %v500_v30 = vpop.xlane.xlu1 %499 }
 0x34e   : > { %766 = vrcp.f32 %v500_v30 }
 0x35b   : > { %v767_v31 = vpop.eup %766 }
 0x383   : > { %v572_v32 = vpop.f32.mrf.mxu1 }
 0x384   : > { %v577_v33 = vmul.f32 %v767_v31, %v572_v32 }
 0x385   : > { %v722_v34 = vpop.f32.mrf.mxu1 }
 0x386   : > { %578 = vst.msk [vmem:[%s260_s29] sm:$0xff] %vm285_vm0, %v577_v33 }
 0x387   : > { %781 = shalt.err (!%p778_p4)
}
 0x388   : > { %s782_s17 = scalar_lea.hbm %s961_s12, 128  ;;  %s786_s20 = scalar_lea.hbm %s1003_s6, 256 }
 0x389   : > { %p783_p7 = scmp.ne.s32.totalorder %s961_s12, %s782_s17  ;;  %p787_p10 = scmp.lt.s32.totalorder %s961_s12, %s1003_s6 }
 0x38a   : > { %p788_p11 = scmp.lt.s32.totalorder %s786_s20, %s782_s17 }
 0x38b   : > { %p784_p8 = pnand %p783_p7, %p906_p5 }
 0x38c   : > { %p789_p12 = por %p788_p11, %p787_p10 }
 0x38d   : > { %p785_p9 = pneg %p784_p8 }
 0x38f   : > { %p790_p13 = pnand %p789_p12, %p785_p9 }
 0x391   : > { %793 = shalt.err (!%p790_p13)
}
 0x392   : > { %723 = dma.vmem_to_hbm [thread:$0]  (%p906_p5), %s594_s9, 128, %s961_s12, %s580_s13  }
 0x393 PF: > { %p729_p0 = scmp.ge.s32.totalorder %s828_s24, 2  ;;  %s605_s29 = sand.u32 1, %s816_s21  }
 0x394   : > { %s606_s10 = scalar_lea.sflag [#allocation3], %s605_s29 }
 0x395   : > { %p726_p1 = pnand %p729_p0, %p910_p6 }
 0x397   : > { %p727_p2 = pneg %p726_p1 }
 0x399   : > { %811 = dma.done.wait (%p727_p2), %s606_s10, 128  }
 0x39a   : > { %813 = vsyncadd (%p727_p2), %s606_s10, 4294967168  ;;  %p16_p3 = scmp.ge.s32.totalorder %s893_s27, 4   ;;  %s1006_s21 = smov %s820_s22 }
 0x39b   : > { %s1007_s22 = smov %s824_s23  ;;  %s1008_s23 = smov %s904_s30 }
 0x39c   : > { %s1009_s24 = smov %s893_s27  ;;  %18 = sbr.rel (!%p16_p3) target bundleno = 3 (0x3), region = 82 }
 0x3a1   :  { %611 = vsyncpa [#allocation3], 1 }
 0x3a2   :  { %613 = vsyncpa [#allocation3 + $0x1], 1 }

</bundles_post_ra>
